<compile_context>
chip_gen: v7x
topology: tpu7x:2x2x1
jax: 0.10.0
libtpu: 0.0.40
codegen_flags: <defaults>
</compile_context>

<pallas_src>
import jax
import jax.numpy as jnp
from jax.experimental import pallas as pl
from jax.experimental.pallas import tpu as pltpu


def scaled_bell_distribution_capped_at_2_times_sigma(n, center, sigma):
    # TODO(synk): original helper is not in the provided source; deterministic
    # stand-in: Gaussian bell over output indices, support capped at +/- 2*sigma.
    idx = jnp.arange(n, dtype=jnp.float32)
    capped = jnp.clip(idx, center - 2.0 * sigma, center + 2.0 * sigma)
    return jnp.exp(-0.5 * ((capped - center) / sigma) ** 2)


def net_v2_forward(data, params):
    """data: (seq, batch, inp) f32.  params: PyTorch-layout weights/biases."""
    w_ih, b_ih, w_hh, b_hh, w_p, b_p, decay, w_out, b_out = params
    seq, batch, inp = data.shape
    assert batch == 2, "original forward's tuple unpacking requires batch == 2"
    hs = w_hh.shape[0]
    out = w_out.shape[0]
    assert seq % 8 == 0 and hs % 8 == 0 and inp <= hs and out <= hs

    lanes = hs                                    # slab lane width (last dim)

    def lane_pad(m):
        return jnp.pad(m, ((0, 0), (0, lanes - m.shape[-1])))

    # ---- Pack everything into ONE 8-row-aligned f32 slab (single DMA). ----
    x0 = lane_pad(data[:, 0, :].astype(jnp.float32))                     # (seq, hs)
    wih = jnp.pad(w_ih.T.astype(jnp.float32), ((0, hs - inp), (0, 0)))   # (hs, hs)
    whh = w_hh.T.astype(jnp.float32)                                     # (hs, hs)
    wp = w_p.T.astype(jnp.float32)                                       # (hs, hs)
    wout = lane_pad(w_out.T.astype(jnp.float32))                         # (hs, hs)
    vecs = jnp.zeros((8, lanes), jnp.float32)
    vecs = vecs.at[0, :hs].set(b_ih + b_hh)       # fused RNNCell bias
    vecs = vecs.at[1, :hs].set(b_p)               # PGLU bias
    vecs = vecs.at[2, :hs].set(decay)             # PGLU decay_rate
    vecs = vecs.at[3, :out].set(b_out)            # fc_out bias
    slab = jnp.concatenate([x0, wih, whh, wp, wout, vecs], axis=0)       # (144, 32)

    o_x, o_wih, o_whh, o_wp, o_wout, o_vec = (
        0, seq, seq + hs, seq + 2 * hs, seq + 3 * hs, seq + 4 * hs)

    def kernel(slab_ref, out_ref):
        bf16 = jnp.bfloat16
        # Hoisted loop-invariant sub-views / casts.  All offsets are multiples
        # of 8 sublanes with full lane extent -> cheap aligned views.
        x_bf = slab_ref[o_x:o_x + seq, :].astype(bf16)          # (seq, hs)
        wih_bf = slab_ref[o_wih:o_wih + hs, :].astype(bf16)     # (hs, hs)
        whh_bf = slab_ref[o_whh:o_whh + hs, :].astype(bf16)
        wp_bf = slab_ref[o_wp:o_wp + hs, :].astype(bf16)
        wout_bf = slab_ref[o_wout:o_wout + hs, :].astype(bf16)
        vecs_v = slab_ref[o_vec:o_vec + 8, :]                   # (8, hs) f32
        brnn, bp = vecs_v[0:1, :], vecs_v[1:2, :]
        dec, bout = vecs_v[2:3, :], vecs_v[3:4, :]

        # Fused input projection for all time steps (one MXU matmul, off the
        # serial chain): xproj[t] = x[t, 0] @ Wih^T + (b_ih + b_hh).
        xproj = jnp.dot(x_bf, wih_bf, preferred_element_type=jnp.float32) + brnn

        hidden = jnp.zeros((1, hs), jnp.float32)  # PGLU activation (live row 0)
        pot = jnp.zeros((1, hs), jnp.float32)     # PGLU potential

        # Fully unrolled (static) sequence loop: 2 bf16 matmuls per step.
        for t in range(seq):
            # nn.RNNCell row 0 (row 1 is dead due to the tuple-unpack quirk).
            pre = xproj[t:t + 1, :] + jnp.dot(hidden.astype(bf16), whh_bf,
                                              preferred_element_type=jnp.float32)
            rnn_out = jnp.tanh(pre)                              # (1, hs) f32
            # PGLU: pot += W(rnn_out) + b_p; hidden = relu(pot);
            #       pot = (pot - relu(pot)) * decay == min(pot, 0) * decay.
            pot = (pot + bp) + jnp.dot(rnn_out.astype(bf16), wp_bf,
                                       preferred_element_type=jnp.float32)
            hidden = jnp.maximum(pot, 0.0)
            pot = jnp.minimum(pot, 0.0) * dec

        # fc_out on the final activation; all batch rows of the original module
        # are identical, so compute once and sublane-broadcast into the padded
        # (8, hs) output slab (wrapper slices [:batch, :out]).
        out0 = jnp.dot(hidden.astype(bf16), wout_bf,
                       preferred_element_type=jnp.float32) + bout
        out_ref[...] = jnp.broadcast_to(out0, out_ref.shape)

    flops = 2 * seq * hs * hs + seq * 2 * (2 * hs * hs) + 2 * hs * hs
    cost = pl.CostEstimate(flops=flops, transcendentals=seq * hs,
                           bytes_accessed=int(slab.size) * 4 + 8 * lanes * 4)

    out_full = pl.pallas_call(
        kernel,
        out_shape=jax.ShapeDtypeStruct((8, lanes), jnp.float32),
        in_specs=[pl.BlockSpec(memory_space=pltpu.MemorySpace.VMEM)],
        out_specs=pl.BlockSpec(memory_space=pltpu.MemorySpace.VMEM),
        compiler_params=pltpu.CompilerParams(vmem_limit_bytes=2 * 1024 * 1024),
        cost_estimate=cost,
    )(slab)
    return out_full[:batch, :out]


def reference_forward(data, params):
    """Pure-JAX f32 (HIGHEST precision) re-implementation of the PyTorch
    forward, including the row-0 tuple-unpacking quirk."""
    w_ih, b_ih, w_hh, b_hh, w_p, b_p, decay, w_out, b_out = params
    seq, batch, _ = data.shape
    hs = w_hh.shape[0]
    hp = jax.lax.Precision.HIGHEST
    hidden = jnp.zeros((batch, hs), jnp.float32)
    pot = jnp.zeros((batch, hs), jnp.float32)
    for step in range(seq):
        x = data[step]
        h_new = jnp.tanh(jnp.dot(x, w_ih.T, precision=hp) + b_ih
                         + jnp.dot(hidden, w_hh.T, precision=hp) + b_hh)
        rnn_out = h_new[0]                        # row-0 unpacking semantics
        new_x = jnp.dot(rnn_out, w_p.T, precision=hp) + b_p
        pot = pot + new_x
        activated = jnp.maximum(pot, 0.0)
        pot = (pot - activated) * decay
        hidden = activated
    return jnp.dot(hidden, w_out.T, precision=hp) + b_out


if __name__ == "__main__":
    SEQ, BATCH, INP, HS, OUT = 8, 2, 16, 32, 8     # batch MUST be 2 (see note)
    INIT_DECAY_CENTER, INIT_DECAY_SIGMA = HS / 2.0, HS / 8.0

    key = jax.random.PRNGKey(0)
    ks = jax.random.split(key, 9)

    def uni(k, shape, bound):
        return jax.random.uniform(k, shape, jnp.float32, -bound, bound)

    bound = 1.0 / (HS ** 0.5)                      # PyTorch default init bound
    w_ih = uni(ks[0], (HS, INP), bound)
    b_ih = uni(ks[1], (HS,), bound)
    w_hh = uni(ks[2], (HS, HS), bound)
    b_hh = uni(ks[3], (HS,), bound)
    w_p = uni(ks[4], (HS, HS), bound)
    b_p = uni(ks[5], (HS,), bound)
    decay = scaled_bell_distribution_capped_at_2_times_sigma(
        HS, INIT_DECAY_CENTER, INIT_DECAY_SIGMA)
    w_out = uni(ks[6], (OUT, HS), bound)
    b_out = uni(ks[7], (OUT,), bound)

    data = jax.random.normal(ks[8], (SEQ, BATCH, INP), jnp.float32)
    params = (w_ih, b_ih, w_hh, b_hh, w_p, b_p, decay, w_out, b_out)

    y = net_v2_forward(data, params)
    jax.block_until_ready(y)

    y_ref = reference_forward(data, params)
    assert y.shape == (BATCH, OUT), y.shape
    # Kernel uses bf16 MXU operands (f32 accumulation); reference is f32 HIGHEST.
    assert jnp.allclose(y, y_ref, atol=2e-2, rtol=2e-2), (y, y_ref)
    print("KERNEL_OK")
</pallas_src>

<mosaic_0001>
module attributes {stable_mosaic.version = 11 : i64} {
  func.func @kernel(%arg0: memref<144x32xf32, #tpu.memory_space<vmem>>, %arg1: memref<8x32xf32, #tpu.memory_space<vmem>>) attributes {dimension_semantics = [], scalar_prefetch = 0 : i64, scratch_operands = 0 : i64, tpu.core_type = #tpu.core_type<tc>} {
    %c0 = arith.constant 0 : index
    %c0_0 = arith.constant 0 : index
    %0 = vector.load %arg0[%c0, %c0_0] : memref<144x32xf32, #tpu.memory_space<vmem>>, vector<8x32xf32>
    %1 = arith.truncf %0 : vector<8x32xf32> to vector<8x32xbf16>
    %c8 = arith.constant 8 : index
    %c0_1 = arith.constant 0 : index
    %2 = vector.load %arg0[%c8, %c0_1] : memref<144x32xf32, #tpu.memory_space<vmem>>, vector<32x32xf32>
    %3 = arith.truncf %2 : vector<32x32xf32> to vector<32x32xbf16>
    %c40 = arith.constant 40 : index
    %c0_2 = arith.constant 0 : index
    %4 = vector.load %arg0[%c40, %c0_2] : memref<144x32xf32, #tpu.memory_space<vmem>>, vector<32x32xf32>
    %5 = arith.truncf %4 : vector<32x32xf32> to vector<32x32xbf16>
    %c72 = arith.constant 72 : index
    %c0_3 = arith.constant 0 : index
    %6 = vector.load %arg0[%c72, %c0_3] : memref<144x32xf32, #tpu.memory_space<vmem>>, vector<32x32xf32>
    %7 = arith.truncf %6 : vector<32x32xf32> to vector<32x32xbf16>
    %c104 = arith.constant 104 : index
    %c0_4 = arith.constant 0 : index
    %8 = vector.load %arg0[%c104, %c0_4] : memref<144x32xf32, #tpu.memory_space<vmem>>, vector<32x32xf32>
    %9 = arith.truncf %8 : vector<32x32xf32> to vector<32x32xbf16>
    %c136 = arith.constant 136 : index
    %c0_5 = arith.constant 0 : index
    %10 = vector.load %arg0[%c136, %c0_5] : memref<144x32xf32, #tpu.memory_space<vmem>>, vector<8x32xf32>
    %11 = vector.extract_strided_slice %10 {offsets = [0, 0], sizes = [1, 32], strides = [1, 1]} : vector<8x32xf32> to vector<1x32xf32>
    %12 = vector.extract_strided_slice %10 {offsets = [1, 0], sizes = [1, 32], strides = [1, 1]} : vector<8x32xf32> to vector<1x32xf32>
    %13 = vector.extract_strided_slice %10 {offsets = [2, 0], sizes = [1, 32], strides = [1, 1]} : vector<8x32xf32> to vector<1x32xf32>
    %14 = vector.extract_strided_slice %10 {offsets = [3, 0], sizes = [1, 32], strides = [1, 1]} : vector<8x32xf32> to vector<1x32xf32>
    %cst = arith.constant dense<0.000000e+00> : vector<8x32xf32>
    %15 = tpu.matmul %1, %3, %cst {dimension_numbers = #tpu.dot_dimension_numbers<[1], [0], [0], [1], [0, 0, 1, 1], [], []>} : vector<8x32xbf16>, vector<32x32xbf16>, vector<8x32xf32> -> vector<8x32xf32>
    %16 = vector.broadcast %11 : vector<1x32xf32> to vector<8x32xf32>
    %17 = arith.addf %15, %16 : vector<8x32xf32>
    %cst_6 = arith.constant 0.000000e+00 : f32
    %18 = vector.broadcast %cst_6 : f32 to vector<1x32xf32>
    %cst_7 = arith.constant 0.000000e+00 : f32
    %19 = vector.broadcast %cst_7 : f32 to vector<1x32xf32>
    %20 = vector.extract_strided_slice %17 {offsets = [0, 0], sizes = [1, 32], strides = [1, 1]} : vector<8x32xf32> to vector<1x32xf32>
    %21 = arith.truncf %18 : vector<1x32xf32> to vector<1x32xbf16>
    %cst_8 = arith.constant dense<0.000000e+00> : vector<1x32xf32>
    %22 = tpu.matmul %21, %5, %cst_8 {dimension_numbers = #tpu.dot_dimension_numbers<[1], [0], [0], [1], [0, 0, 1, 1], [], []>} : vector<1x32xbf16>, vector<32x32xbf16>, vector<1x32xf32> -> vector<1x32xf32>
    %23 = arith.addf %20, %22 : vector<1x32xf32>
    %24 = math.tanh %23 : vector<1x32xf32>
    %25 = arith.addf %19, %12 : vector<1x32xf32>
    %26 = arith.truncf %24 : vector<1x32xf32> to vector<1x32xbf16>
    %cst_9 = arith.constant dense<0.000000e+00> : vector<1x32xf32>
    %27 = tpu.matmul %26, %7, %cst_9 {dimension_numbers = #tpu.dot_dimension_numbers<[1], [0], [0], [1], [0, 0, 1, 1], [], []>} : vector<1x32xbf16>, vector<32x32xbf16>, vector<1x32xf32> -> vector<1x32xf32>
    %28 = arith.addf %25, %27 : vector<1x32xf32>
    %cst_10 = arith.constant 0.000000e+00 : f32
    %29 = vector.broadcast %cst_10 : f32 to vector<1x32xf32>
    %30 = arith.maximumf %28, %29 : vector<1x32xf32>
    %cst_11 = arith.constant 0.000000e+00 : f32
    %31 = vector.broadcast %cst_11 : f32 to vector<1x32xf32>
    %32 = arith.minimumf %28, %31 : vector<1x32xf32>
    %33 = arith.mulf %32, %13 : vector<1x32xf32>
    %34 = vector.extract_strided_slice %17 {offsets = [1, 0], sizes = [1, 32], strides = [1, 1]} : vector<8x32xf32> to vector<1x32xf32>
    %35 = arith.truncf %30 : vector<1x32xf32> to vector<1x32xbf16>
    %cst_12 = arith.constant dense<0.000000e+00> : vector<1x32xf32>
    %36 = tpu.matmul %35, %5, %cst_12 {dimension_numbers = #tpu.dot_dimension_numbers<[1], [0], [0], [1], [0, 0, 1, 1], [], []>} : vector<1x32xbf16>, vector<32x32xbf16>, vector<1x32xf32> -> vector<1x32xf32>
    %37 = arith.addf %34, %36 : vector<1x32xf32>
    %38 = math.tanh %37 : vector<1x32xf32>
    %39 = arith.addf %33, %12 : vector<1x32xf32>
    %40 = arith.truncf %38 : vector<1x32xf32> to vector<1x32xbf16>
    %cst_13 = arith.constant dense<0.000000e+00> : vector<1x32xf32>
    %41 = tpu.matmul %40, %7, %cst_13 {dimension_numbers = #tpu.dot_dimension_numbers<[1], [0], [0], [1], [0, 0, 1, 1], [], []>} : vector<1x32xbf16>, vector<32x32xbf16>, vector<1x32xf32> -> vector<1x32xf32>
    %42 = arith.addf %39, %41 : vector<1x32xf32>
    %cst_14 = arith.constant 0.000000e+00 : f32
    %43 = vector.broadcast %cst_14 : f32 to vector<1x32xf32>
    %44 = arith.maximumf %42, %43 : vector<1x32xf32>
    %cst_15 = arith.constant 0.000000e+00 : f32
    %45 = vector.broadcast %cst_15 : f32 to vector<1x32xf32>
    %46 = arith.minimumf %42, %45 : vector<1x32xf32>
    %47 = arith.mulf %46, %13 : vector<1x32xf32>
    %48 = vector.extract_strided_slice %17 {offsets = [2, 0], sizes = [1, 32], strides = [1, 1]} : vector<8x32xf32> to vector<1x32xf32>
    %49 = arith.truncf %44 : vector<1x32xf32> to vector<1x32xbf16>
    %cst_16 = arith.constant dense<0.000000e+00> : vector<1x32xf32>
    %50 = tpu.matmul %49, %5, %cst_16 {dimension_numbers = #tpu.dot_dimension_numbers<[1], [0], [0], [1], [0, 0, 1, 1], [], []>} : vector<1x32xbf16>, vector<32x32xbf16>, vector<1x32xf32> -> vector<1x32xf32>
    %51 = arith.addf %48, %50 : vector<1x32xf32>
    %52 = math.tanh %51 : vector<1x32xf32>
    %53 = arith.addf %47, %12 : vector<1x32xf32>
    %54 = arith.truncf %52 : vector<1x32xf32> to vector<1x32xbf16>
    %cst_17 = arith.constant dense<0.000000e+00> : vector<1x32xf32>
    %55 = tpu.matmul %54, %7, %cst_17 {dimension_numbers = #tpu.dot_dimension_numbers<[1], [0], [0], [1], [0, 0, 1, 1], [], []>} : vector<1x32xbf16>, vector<32x32xbf16>, vector<1x32xf32> -> vector<1x32xf32>
    %56 = arith.addf %53, %55 : vector<1x32xf32>
    %cst_18 = arith.constant 0.000000e+00 : f32
    %57 = vector.broadcast %cst_18 : f32 to vector<1x32xf32>
    %58 = arith.maximumf %56, %57 : vector<1x32xf32>
    %cst_19 = arith.constant 0.000000e+00 : f32
    %59 = vector.broadcast %cst_19 : f32 to vector<1x32xf32>
    %60 = arith.minimumf %56, %59 : vector<1x32xf32>
    %61 = arith.mulf %60, %13 : vector<1x32xf32>
    %62 = vector.extract_strided_slice %17 {offsets = [3, 0], sizes = [1, 32], strides = [1, 1]} : vector<8x32xf32> to vector<1x32xf32>
    %63 = arith.truncf %58 : vector<1x32xf32> to vector<1x32xbf16>
    %cst_20 = arith.constant dense<0.000000e+00> : vector<1x32xf32>
    %64 = tpu.matmul %63, %5, %cst_20 {dimension_numbers = #tpu.dot_dimension_numbers<[1], [0], [0], [1], [0, 0, 1, 1], [], []>} : vector<1x32xbf16>, vector<32x32xbf16>, vector<1x32xf32> -> vector<1x32xf32>
    %65 = arith.addf %62, %64 : vector<1x32xf32>
    %66 = math.tanh %65 : vector<1x32xf32>
    %67 = arith.addf %61, %12 : vector<1x32xf32>
    %68 = arith.truncf %66 : vector<1x32xf32> to vector<1x32xbf16>
    %cst_21 = arith.constant dense<0.000000e+00> : vector<1x32xf32>
    %69 = tpu.matmul %68, %7, %cst_21 {dimension_numbers = #tpu.dot_dimension_numbers<[1], [0], [0], [1], [0, 0, 1, 1], [], []>} : vector<1x32xbf16>, vector<32x32xbf16>, vector<1x32xf32> -> vector<1x32xf32>
    %70 = arith.addf %67, %69 : vector<1x32xf32>
    %cst_22 = arith.constant 0.000000e+00 : f32
    %71 = vector.broadcast %cst_22 : f32 to vector<1x32xf32>
    %72 = arith.maximumf %70, %71 : vector<1x32xf32>
    %cst_23 = arith.constant 0.000000e+00 : f32
    %73 = vector.broadcast %cst_23 : f32 to vector<1x32xf32>
    %74 = arith.minimumf %70, %73 : vector<1x32xf32>
    %75 = arith.mulf %74, %13 : vector<1x32xf32>
    %76 = vector.extract_strided_slice %17 {offsets = [4, 0], sizes = [1, 32], strides = [1, 1]} : vector<8x32xf32> to vector<1x32xf32>
    %77 = arith.truncf %72 : vector<1x32xf32> to vector<1x32xbf16>
    %cst_24 = arith.constant dense<0.000000e+00> : vector<1x32xf32>
    %78 = tpu.matmul %77, %5, %cst_24 {dimension_numbers = #tpu.dot_dimension_numbers<[1], [0], [0], [1], [0, 0, 1, 1], [], []>} : vector<1x32xbf16>, vector<32x32xbf16>, vector<1x32xf32> -> vector<1x32xf32>
    %79 = arith.addf %76, %78 : vector<1x32xf32>
    %80 = math.tanh %79 : vector<1x32xf32>
    %81 = arith.addf %75, %12 : vector<1x32xf32>
    %82 = arith.truncf %80 : vector<1x32xf32> to vector<1x32xbf16>
    %cst_25 = arith.constant dense<0.000000e+00> : vector<1x32xf32>
    %83 = tpu.matmul %82, %7, %cst_25 {dimension_numbers = #tpu.dot_dimension_numbers<[1], [0], [0], [1], [0, 0, 1, 1], [], []>} : vector<1x32xbf16>, vector<32x32xbf16>, vector<1x32xf32> -> vector<1x32xf32>
    %84 = arith.addf %81, %83 : vector<1x32xf32>
    %cst_26 = arith.constant 0.000000e+00 : f32
    %85 = vector.broadcast %cst_26 : f32 to vector<1x32xf32>
    %86 = arith.maximumf %84, %85 : vector<1x32xf32>
    %cst_27 = arith.constant 0.000000e+00 : f32
    %87 = vector.broadcast %cst_27 : f32 to vector<1x32xf32>
    %88 = arith.minimumf %84, %87 : vector<1x32xf32>
    %89 = arith.mulf %88, %13 : vector<1x32xf32>
    %90 = vector.extract_strided_slice %17 {offsets = [5, 0], sizes = [1, 32], strides = [1, 1]} : vector<8x32xf32> to vector<1x32xf32>
    %91 = arith.truncf %86 : vector<1x32xf32> to vector<1x32xbf16>
    %cst_28 = arith.constant dense<0.000000e+00> : vector<1x32xf32>
    %92 = tpu.matmul %91, %5, %cst_28 {dimension_numbers = #tpu.dot_dimension_numbers<[1], [0], [0], [1], [0, 0, 1, 1], [], []>} : vector<1x32xbf16>, vector<32x32xbf16>, vector<1x32xf32> -> vector<1x32xf32>
    %93 = arith.addf %90, %92 : vector<1x32xf32>
    %94 = math.tanh %93 : vector<1x32xf32>
    %95 = arith.addf %89, %12 : vector<1x32xf32>
    %96 = arith.truncf %94 : vector<1x32xf32> to vector<1x32xbf16>
    %cst_29 = arith.constant dense<0.000000e+00> : vector<1x32xf32>
    %97 = tpu.matmul %96, %7, %cst_29 {dimension_numbers = #tpu.dot_dimension_numbers<[1], [0], [0], [1], [0, 0, 1, 1], [], []>} : vector<1x32xbf16>, vector<32x32xbf16>, vector<1x32xf32> -> vector<1x32xf32>
    %98 = arith.addf %95, %97 : vector<1x32xf32>
    %cst_30 = arith.constant 0.000000e+00 : f32
    %99 = vector.broadcast %cst_30 : f32 to vector<1x32xf32>
    %100 = arith.maximumf %98, %99 : vector<1x32xf32>
    %cst_31 = arith.constant 0.000000e+00 : f32
    %101 = vector.broadcast %cst_31 : f32 to vector<1x32xf32>
    %102 = arith.minimumf %98, %101 : vector<1x32xf32>
    %103 = arith.mulf %102, %13 : vector<1x32xf32>
    %104 = vector.extract_strided_slice %17 {offsets = [6, 0], sizes = [1, 32], strides = [1, 1]} : vector<8x32xf32> to vector<1x32xf32>
    %105 = arith.truncf %100 : vector<1x32xf32> to vector<1x32xbf16>
    %cst_32 = arith.constant dense<0.000000e+00> : vector<1x32xf32>
    %106 = tpu.matmul %105, %5, %cst_32 {dimension_numbers = #tpu.dot_dimension_numbers<[1], [0], [0], [1], [0, 0, 1, 1], [], []>} : vector<1x32xbf16>, vector<32x32xbf16>, vector<1x32xf32> -> vector<1x32xf32>
    %107 = arith.addf %104, %106 : vector<1x32xf32>
    %108 = math.tanh %107 : vector<1x32xf32>
    %109 = arith.addf %103, %12 : vector<1x32xf32>
    %110 = arith.truncf %108 : vector<1x32xf32> to vector<1x32xbf16>
    %cst_33 = arith.constant dense<0.000000e+00> : vector<1x32xf32>
    %111 = tpu.matmul %110, %7, %cst_33 {dimension_numbers = #tpu.dot_dimension_numbers<[1], [0], [0], [1], [0, 0, 1, 1], [], []>} : vector<1x32xbf16>, vector<32x32xbf16>, vector<1x32xf32> -> vector<1x32xf32>
    %112 = arith.addf %109, %111 : vector<1x32xf32>
    %cst_34 = arith.constant 0.000000e+00 : f32
    %113 = vector.broadcast %cst_34 : f32 to vector<1x32xf32>
    %114 = arith.maximumf %112, %113 : vector<1x32xf32>
    %cst_35 = arith.constant 0.000000e+00 : f32
    %115 = vector.broadcast %cst_35 : f32 to vector<1x32xf32>
    %116 = arith.minimumf %112, %115 : vector<1x32xf32>
    %117 = arith.mulf %116, %13 : vector<1x32xf32>
    %118 = vector.extract_strided_slice %17 {offsets = [7, 0], sizes = [1, 32], strides = [1, 1]} : vector<8x32xf32> to vector<1x32xf32>
    %119 = arith.truncf %114 : vector<1x32xf32> to vector<1x32xbf16>
    %cst_36 = arith.constant dense<0.000000e+00> : vector<1x32xf32>
    %120 = tpu.matmul %119, %5, %cst_36 {dimension_numbers = #tpu.dot_dimension_numbers<[1], [0], [0], [1], [0, 0, 1, 1], [], []>} : vector<1x32xbf16>, vector<32x32xbf16>, vector<1x32xf32> -> vector<1x32xf32>
    %121 = arith.addf %118, %120 : vector<1x32xf32>
    %122 = math.tanh %121 : vector<1x32xf32>
    %123 = arith.addf %117, %12 : vector<1x32xf32>
    %124 = arith.truncf %122 : vector<1x32xf32> to vector<1x32xbf16>
    %cst_37 = arith.constant dense<0.000000e+00> : vector<1x32xf32>
    %125 = tpu.matmul %124, %7, %cst_37 {dimension_numbers = #tpu.dot_dimension_numbers<[1], [0], [0], [1], [0, 0, 1, 1], [], []>} : vector<1x32xbf16>, vector<32x32xbf16>, vector<1x32xf32> -> vector<1x32xf32>
    %126 = arith.addf %123, %125 : vector<1x32xf32>
    %cst_38 = arith.constant 0.000000e+00 : f32
    %127 = vector.broadcast %cst_38 : f32 to vector<1x32xf32>
    %128 = arith.maximumf %126, %127 : vector<1x32xf32>
    %129 = arith.truncf %128 : vector<1x32xf32> to vector<1x32xbf16>
    %cst_39 = arith.constant dense<0.000000e+00> : vector<1x32xf32>
    %130 = tpu.matmul %129, %9, %cst_39 {dimension_numbers = #tpu.dot_dimension_numbers<[1], [0], [0], [1], [0, 0, 1, 1], [], []>} : vector<1x32xbf16>, vector<32x32xbf16>, vector<1x32xf32> -> vector<1x32xf32>
    %131 = arith.addf %130, %14 : vector<1x32xf32>
    %132 = vector.shape_cast %131 : vector<1x32xf32> to vector<1x32xf32>
    %133 = vector.broadcast %132 : vector<1x32xf32> to vector<8x32xf32>
    %c0_40 = arith.constant 0 : index
    %c0_41 = arith.constant 0 : index
    %134 = vector.load %arg1[%c0_40, %c0_41] : memref<8x32xf32, #tpu.memory_space<vmem>>, vector<8x32xf32>
    tpu.vector_store %arg1[%c0_40, %c0_41], %133 {strides = array<i32>} : memref<8x32xf32, #tpu.memory_space<vmem>>, vector<8x32xf32>,
    return
  }
}

</mosaic_0001>

<bundles_post_ra>
// kernel: tpu_custom_call.1
= control target key start
LH: loop header
LB: loop body
LE: loop exit
PB: predicated region body
PF: predicated region fallthrough
CT: control target
= control target key end

     0   :  { %v1259_v3 = vmov 0.0   ;;  %vm1260_vm0 = vmmov 0   ;;  %s1508_s0 = inlined_call_operand.vmem [shape: f32[144,32], index: 0, kind: input, shape index: {}]   ;;  %s1509_s1 = inlined_call_operand.hbm [shape: f32[8,32], index: 1, kind: output, shape index: {}]  }
   0x1   :  { %v12_v0 = vld [vmem:[%s1508_s0 + $0x8] sm:$0xff]  ;;  %v13_v1 = vld [vmem:[%s1508_s0 + $0x10] sm:$0xff]  ;;  %1071 = vmatprep.subr.bf16.mxu0 %v1259_v3  ;;  %1079 = vmatprep.subr.bf16.mxu1 %v1259_v3  ;;  %v14_v6 = vld [vmem:[%s1508_s0 + $0x18] sm:$0xff] }
   0x2   :  { %v18_v2 = vld [vmem:[%s1508_s0 + $0x28] sm:$0xff]  ;;  %v16_v4 = vpack.c.bf16 %v13_v1, %v12_v0  ;;  %v19_v5 = vld [vmem:[%s1508_s0 + $0x30] sm:$0xff]  ;;  %v15_v7 = vld [vmem:[%s1508_s0 + $0x20] sm:$0xff]  ;;  %1075 = vmatprep.mubr.msk.bf16.mxu0 %vm1260_vm0, %v1259_v3  ;;  %1083 = vmatprep.mubr.msk.bf16.mxu1 %vm1260_vm0, %v1259_v3 }
   0x3   :  { %v1293_v8 = vpack.c.bf16 %v19_v5, %v18_v2  ;;  %v20_v9 = vld [vmem:[%s1508_s0 + $0x38] sm:$0xff]  ;;  %v21_v10 = vld [vmem:[%s1508_s0 + $0x40] sm:$0xff]  ;;  %v17_v11 = vpack.c.bf16 %v15_v7, %v14_v6 }
   0x4   :  { %1072 = vmatpush3.bf16.msra.mxu0 %v16_v4  ;;  %v10_v12 = vld [vmem:[%s1508_s0] sm:$0xff] }
   0x5   :  { %6 = vsyncpa [#allocation3], 0  ;;  %1080 = vmatpush3.bf16.msra.mxu1 %v1293_v8  ;;  %1073 = vmatprep.subr.bf16.mxu0 %v1259_v3  ;;  %v1310_v13 = vpack.c.bf16 %v21_v10, %v20_v9  ;;  %v11_v14 = vpack.c.bf16 %v10_v12, %v10_v12  ;;  %vm41_vm1 = vcmask 261120   ;;  %v1261_v15 = vmov 0   ;;  %v24_v16 = vld [vmem:[%s1508_s0 + $0x48] sm:$0xff]  ;;  %v25_v17 = vld [vmem:[%s1508_s0 + $0x50] sm:$0xff] }
   0x6   :  { %1081 = vmatprep.subr.bf16.mxu1 %v1259_v3  ;;  %v1331_v18 = vpack.c.bf16 %v25_v17, %v24_v16  ;;  %v26_v19 = vld [vmem:[%s1508_s0 + $0x58] sm:$0xff]  ;;  %v27_v20 = vld [vmem:[%s1508_s0 + $0x60] sm:$0xff]  ;;  %v37_v22 = vlaneseq  ;;  %v1351_v25 = vld [vmem:[%s1508_s0 + $0x88] sm:$0xff] }
   0x7   :  { %v1341_v21 = vpack.c.bf16 %v27_v20, %v26_v19  ;;  %v1383_v58 = vrot.slane %v1351_v25, 1 }
   0x8   :  { %1074 = vmatpush3.bf16.msra.mxu0 %v17_v11  ;;  %v1345_v23 = vshrl.u32 %v37_v22, 7 }
   0x9   :  { %1082 = vmatpush3.bf16.msra.mxu1 %v1310_v13  ;;  %1087 = vmatprep.subr.bf16.mxu0 %v1259_v3 }
   0xa   :  { %1095 = vmatprep.subr.bf16.mxu1 %v1259_v3  ;;  %v39_v24 = vsub.s32 0, %v1345_v23 }
   0xb   :  { %1076 = vmatmul.mubr.msk.bf16.vlgmr.msra.gmra.mrb[0].mxu0 %vm41_vm1, %v11_v14 }
   0xc   :  { %1084 = vmatmul.mubr.bf16.vlgmr.msra.gmra.mrb[0].mxu1 %v1261_v15  ;;  %1091 = vmatprep.mubr.msk.bf16.mxu0 %vm1260_vm0, %v1259_v3  ;;  %v40_v26 = vrot.slane %v1351_v25, %v39_v24 }
   0xd   :  { %1096 = vmatpush3.bf16.msra.mxu1 %v1293_v8  ;;  %1099 = vmatprep.mubr.msk.bf16.mxu1 %vm1260_vm0, %v1259_v3 }
   0xe   :  { %1097 = vmatprep.subr.bf16.mxu1 %v1259_v3  ;;  %1088 = vmatpush3.bf16.msra.mxu0 %v1331_v18 }
   0xf   :  { %1089 = vmatprep.subr.bf16.mxu0 %v1259_v3 }
  0x11   :  { %1098 = vmatpush3.bf16.msra.mxu1 %v1310_v13 }
  0x12   :  { %1111 = vmatprep.subr.bf16.mxu1 %v1259_v3  ;;  %1090 = vmatpush3.bf16.msra.mxu0 %v1341_v21 }
  0x13   :  { %1103 = vmatprep.subr.bf16.mxu0 %v1259_v3 }
  0xde   :  { %v79_v27 = vpop.f32.mrb[0].mxu0 }
  0xdf   :  { %v1356_v28 = vadd.f32 %v79_v27, %v40_v26  ;;  %v122_v29 = vpop.f32.mrb[0].mxu1  ;;  %v1077_v30 = vpop.f32.mrb[1].mxu0 }
  0xe0   :  { %v1085_v31 = vpop.f32.mrb[1].mxu1  ;;  %v82_v32 = vpop.f32.mrb[2].mxu0 }
  0xe1   :  { %v128_v33 = vadd.f32 %v122_v29, %v1356_v28  ;;  %v125_v34 = vpop.f32.mrb[2].mxu1  ;;  %v1078_v35 = vpop.f32.mrb[3].mxu0 }
  0xe2   :  { %v1086_v36 = vpop.f32.mrb[3].mxu1 }
  0xe3   :  { %1219 = vtanh.f32 %v128_v33 }
  0xed   :  { %v1220_v37 = vpop.eup %1219 }
  0xee   :  { %v131_v38 = vpack.c.bf16 %v1220_v37, %v1220_v37 }
  0xf0   :  { %1092 = vmatmul.mubr.msk.bf16.vlgmr.msra.gmra.mrb[4].mxu0 %vm41_vm1, %v131_v38 }
  0xf1   :  { %1104 = vmatpush3.bf16.msra.mxu0 %v1331_v18  ;;  %1107 = vmatprep.mubr.msk.bf16.mxu0 %vm1260_vm0, %v1259_v3 }
  0xf2   :  { %1105 = vmatprep.subr.bf16.mxu0 %v1259_v3 }
  0xf5   :  { %1106 = vmatpush3.bf16.msra.mxu0 %v1341_v21 }
  0xf6   :  { %1119 = vmatprep.subr.bf16.mxu0 %v1259_v3 }
 0x1c3   :  { %v169_v39 = vpop.f32.mrb[4].mxu0 }
 0x1c4   :  { %v176_v40 = vrot.slane %v169_v39, 7  ;;  %v1093_v41 = vpop.f32.mrb[5].mxu0 }
 0x1c5   :  { %v172_v42 = vpop.f32.mrb[6].mxu0 }
 0x1c6   :  { %v178_v43 = vadd.f32 %v176_v40, %v1351_v25  ;;  %v1094_v44 = vpop.f32.mrb[7].mxu0 }
 0x1c8   :  { %v179_v45 = vmax.f32 %v178_v43, 0.0  ;;  %v180_v57 = vmin.f32 %v178_v43, 0.0 }
 0x1ca   :  { %v185_v46 = vpack.c.bf16 %v179_v45, %v179_v45  ;;  %v184_v59 = vmul.f32 %v1383_v58, %v180_v57 }
 0x1cc   :  { %v187_v47 = vshrl.u32 %v185_v46, 16  ;;  %v237_v61 = vadd.f32 %v184_v59, %v1351_v25 }
 0x1ce   :  { %1100 = vmatmul.mubr.msk.bf16.vlgmr.msra.gmra.mrb[4].mxu1 %vm41_vm1, %v187_v47 }
 0x1cf   :  { %1112 = vmatpush3.bf16.msra.mxu1 %v1293_v8  ;;  %1115 = vmatprep.mubr.msk.bf16.mxu1 %vm1260_vm0, %v1259_v3 }
 0x1d0   :  { %1113 = vmatprep.subr.bf16.mxu1 %v1259_v3 }
 0x1d3   :  { %1114 = vmatpush3.bf16.msra.mxu1 %v1310_v13 }
 0x1d4   :  { %1127 = vmatprep.subr.bf16.mxu1 %v1259_v3 }
 0x2a1   :  { %v226_v48 = vpop.f32.mrb[4].mxu1 }
 0x2a2   :  { %v233_v49 = vrot.slane %v226_v48, 7  ;;  %v1101_v50 = vpop.f32.mrb[5].mxu1 }
 0x2a3   :  { %v229_v51 = vpop.f32.mrb[6].mxu1 }
 0x2a4   :  { %v235_v52 = vadd.f32 %v233_v49, %v1356_v28  ;;  %v1102_v53 = vpop.f32.mrb[7].mxu1 }
 0x2a6   :  { %1221 = vtanh.f32 %v235_v52 }
 0x2b0   :  { %v1222_v54 = vpop.eup %1221 }
 0x2b1   :  { %v238_v55 = vpack.c.bf16 %v1222_v54, %v1222_v54 }
 0x2b3   :  { %v240_v56 = vshrl.u32 %v238_v55, 16 }
 0x2b5   :  { %1108 = vmatmul.mubr.msk.bf16.vlgmr.msra.gmra.mrb[8].mxu0 %vm41_vm1, %v240_v56 }
 0x2b6   :  { %1120 = vmatpush3.bf16.msra.mxu0 %v1331_v18  ;;  %1123 = vmatprep.mubr.msk.bf16.mxu0 %vm1260_vm0, %v1259_v3 }
 0x2b7   :  { %1121 = vmatprep.subr.bf16.mxu0 %v1259_v3 }
 0x2ba   :  { %1122 = vmatpush3.bf16.msra.mxu0 %v1341_v21 }
 0x2bb   :  { %1135 = vmatprep.subr.bf16.mxu0 %v1259_v3 }
 0x388   :  { %v279_v60 = vpop.f32.mrb[8].mxu0 }
 0x389   :  { %v286_v62 = vrot.slane %v279_v60, 7  ;;  %v1109_v63 = vpop.f32.mrb[9].mxu0 }
 0x38a   :  { %v282_v0 = vpop.f32.mrb[10].mxu0 }
 0x38b   :  { %v288_v1 = vadd.f32 %v286_v62, %v237_v61  ;;  %v1110_v2 = vpop.f32.mrb[11].mxu0 }
 0x38d   :  { %v289_v4 = vmax.f32 %v288_v1, 0.0  ;;  %v290_v19 = vmin.f32 %v288_v1, 0.0 }
 0x38f   :  { %v292_v5 = vpack.c.bf16 %v289_v4, %v289_v4  ;;  %v291_v20 = vmul.f32 %v290_v19, %v1383_v58 }
 0x391   :  { %v294_v6 = vshrl.u32 %v292_v5, 16  ;;  %v344_v26 = vadd.f32 %v291_v20, %v1351_v25 }
 0x393   :  { %1116 = vmatmul.mubr.msk.bf16.vlgmr.msra.gmra.mrb[8].mxu1 %vm41_vm1, %v294_v6 }
 0x394   :  { %1128 = vmatpush3.bf16.msra.mxu1 %v1293_v8  ;;  %1131 = vmatprep.mubr.msk.bf16.mxu1 %vm1260_vm0, %v1259_v3 }
 0x395   :  { %1129 = vmatprep.subr.bf16.mxu1 %v1259_v3 }
 0x398   :  { %1130 = vmatpush3.bf16.msra.mxu1 %v1310_v13 }
 0x399   :  { %1143 = vmatprep.subr.bf16.mxu1 %v1259_v3 }
 0x466   :  { %v333_v7 = vpop.f32.mrb[8].mxu1 }
 0x467   :  { %v340_v9 = vrot.slane %v333_v7, 6  ;;  %v1117_v10 = vpop.f32.mrb[9].mxu1 }
 0x468   :  { %v336_v11 = vpop.f32.mrb[10].mxu1 }
 0x469   :  { %v342_v12 = vadd.f32 %v340_v9, %v1356_v28  ;;  %v1118_v14 = vpop.f32.mrb[11].mxu1 }
 0x46b   :  { %1223 = vtanh.f32 %v342_v12 }
 0x475   :  { %v1224_v15 = vpop.eup %1223 }
 0x476   :  { %v345_v16 = vpack.c.bf16 %v1224_v15, %v1224_v15 }
 0x478   :  { %v347_v17 = vrot.slane %v345_v16, 1 }
 0x47a   :  { %1124 = vmatmul.mubr.msk.bf16.vlgmr.msra.gmra.mrb[12].mxu0 %vm41_vm1, %v347_v17 }
 0x47b   :  { %1136 = vmatpush3.bf16.msra.mxu0 %v1331_v18  ;;  %1139 = vmatprep.mubr.msk.bf16.mxu0 %vm1260_vm0, %v1259_v3 }
 0x47c   :  { %1137 = vmatprep.subr.bf16.mxu0 %v1259_v3 }
 0x47f   :  { %1138 = vmatpush3.bf16.msra.mxu0 %v1341_v21 }
 0x480   :  { %1151 = vmatprep.subr.bf16.mxu0 %v1259_v3 }
 0x54d   :  { %v385_v22 = vpop.f32.mrb[12].mxu0 }
 0x54e   :  { %v392_v27 = vrot.slane %v385_v22, 7  ;;  %v1125_v29 = vpop.f32.mrb[13].mxu0 }
 0x54f   :  { %v388_v30 = vpop.f32.mrb[14].mxu0 }
 0x550   :  { %v394_v31 = vadd.f32 %v392_v27, %v344_v26  ;;  %v1126_v32 = vpop.f32.mrb[15].mxu0 }
 0x552   :  { %v395_v33 = vmax.f32 %v394_v31, 0.0  ;;  %v396_v46 = vmin.f32 %v394_v31, 0.0 }
 0x554   :  { %v398_v34 = vpack.c.bf16 %v395_v33, %v395_v33  ;;  %v397_v47 = vmul.f32 %v396_v46, %v1383_v58 }
 0x556   :  { %v400_v35 = vshrl.u32 %v398_v34, 16  ;;  %v450_v49 = vadd.f32 %v397_v47, %v1351_v25 }
 0x558   :  { %1132 = vmatmul.mubr.msk.bf16.vlgmr.msra.gmra.mrb[12].mxu1 %vm41_vm1, %v400_v35 }
 0x559   :  { %1144 = vmatpush3.bf16.msra.mxu1 %v1293_v8  ;;  %1147 = vmatprep.mubr.msk.bf16.mxu1 %vm1260_vm0, %v1259_v3 }
 0x55a   :  { %1145 = vmatprep.subr.bf16.mxu1 %v1259_v3 }
 0x55d   :  { %1146 = vmatpush3.bf16.msra.mxu1 %v1310_v13 }
 0x55e   :  { %1159 = vmatprep.subr.bf16.mxu1 %v1259_v3 }
 0x62b   :  { %v439_v36 = vpop.f32.mrb[12].mxu1 }
 0x62c   :  { %v446_v37 = vrot.slane %v439_v36, 5  ;;  %v1133_v38 = vpop.f32.mrb[13].mxu1 }
 0x62d   :  { %v442_v39 = vpop.f32.mrb[14].mxu1 }
 0x62e   :  { %v448_v40 = vadd.f32 %v446_v37, %v1356_v28  ;;  %v1134_v41 = vpop.f32.mrb[15].mxu1 }
 0x630   :  { %1225 = vtanh.f32 %v448_v40 }
 0x63a   :  { %v1226_v42 = vpop.eup %1225 }
 0x63b   :  { %v451_v43 = vpack.c.bf16 %v1226_v42, %v1226_v42 }
 0x63d   :  { %v453_v44 = vshrl.u32 %v451_v43, 16 }
 0x63f   :  { %v455_v45 = vrot.slane %v453_v44, 1 }
 0x641   :  { %1140 = vmatmul.mubr.msk.bf16.vlgmr.msra.gmra.mrb[16].mxu0 %vm41_vm1, %v455_v45 }
 0x642   :  { %1152 = vmatpush3.bf16.msra.mxu0 %v1331_v18  ;;  %1155 = vmatprep.mubr.msk.bf16.mxu0 %vm1260_vm0, %v1259_v3 }
 0x643   :  { %1153 = vmatprep.subr.bf16.mxu0 %v1259_v3 }
 0x646   :  { %1154 = vmatpush3.bf16.msra.mxu0 %v1341_v21 }
 0x647   :  { %1167 = vmatprep.subr.bf16.mxu0 %v1259_v3 }
 0x714   :  { %v493_v48 = vpop.f32.mrb[16].mxu0 }
 0x715   :  { %v500_v50 = vrot.slane %v493_v48, 7  ;;  %v1141_v51 = vpop.f32.mrb[17].mxu0 }
 0x716   :  { %v496_v52 = vpop.f32.mrb[18].mxu0 }
 0x717   :  { %v502_v53 = vadd.f32 %v500_v50, %v450_v49  ;;  %v1142_v54 = vpop.f32.mrb[19].mxu0 }
 0x719   :  { %v503_v55 = vmax.f32 %v502_v53, 0.0  ;;  %v504_v5 = vmin.f32 %v502_v53, 0.0 }
 0x71b   :  { %v506_v56 = vpack.c.bf16 %v503_v55, %v503_v55  ;;  %v505_v6 = vmul.f32 %v504_v5, %v1383_v58 }
 0x71d   :  { %v508_v57 = vshrl.u32 %v506_v56, 16  ;;  %v558_v9 = vadd.f32 %v505_v6, %v1351_v25 }
 0x71f   :  { %1148 = vmatmul.mubr.msk.bf16.vlgmr.msra.gmra.mrb[16].mxu1 %vm41_vm1, %v508_v57 }
 0x720   :  { %1160 = vmatpush3.bf16.msra.mxu1 %v1293_v8  ;;  %1163 = vmatprep.mubr.msk.bf16.mxu1 %vm1260_vm0, %v1259_v3 }
 0x721   :  { %1161 = vmatprep.subr.bf16.mxu1 %v1259_v3 }
 0x724   :  { %1162 = vmatpush3.bf16.msra.mxu1 %v1310_v13 }
 0x725   :  { %1175 = vmatprep.subr.bf16.mxu1 %v1259_v3 }
 0x7f2   :  { %v547_v59 = vpop.f32.mrb[16].mxu1 }
 0x7f3   :  { %v554_v60 = vrot.slane %v547_v59, 4  ;;  %v1149_v61 = vpop.f32.mrb[17].mxu1 }
 0x7f4   :  { %v550_v62 = vpop.f32.mrb[18].mxu1 }
 0x7f5   :  { %v556_v63 = vadd.f32 %v554_v60, %v1356_v28  ;;  %v1150_v0 = vpop.f32.mrb[19].mxu1 }
 0x7f7   :  { %1227 = vtanh.f32 %v556_v63 }
 0x801   :  { %v1228_v1 = vpop.eup %1227 }
 0x802   :  { %v559_v2 = vpack.c.bf16 %v1228_v1, %v1228_v1 }
 0x804   :  { %v561_v4 = vrot.slane %v559_v2, 2 }
 0x806   :  { %1156 = vmatmul.mubr.msk.bf16.vlgmr.msra.gmra.mrb[20].mxu0 %vm41_vm1, %v561_v4 }
 0x807   :  { %1168 = vmatpush3.bf16.msra.mxu0 %v1331_v18  ;;  %1171 = vmatprep.mubr.msk.bf16.mxu0 %vm1260_vm0, %v1259_v3 }
 0x808   :  { %1169 = vmatprep.subr.bf16.mxu0 %v1259_v3 }
 0x80b   :  { %1170 = vmatpush3.bf16.msra.mxu0 %v1341_v21 }
 0x80c   :  { %1183 = vmatprep.subr.bf16.mxu0 %v1259_v3 }
 0x8d9   :  { %v599_v7 = vpop.f32.mrb[20].mxu0 }
 0x8da   :  { %v606_v10 = vrot.slane %v599_v7, 7  ;;  %v1157_v11 = vpop.f32.mrb[21].mxu0 }
 0x8db   :  { %v602_v12 = vpop.f32.mrb[22].mxu0 }
 0x8dc   :  { %v608_v14 = vadd.f32 %v606_v10, %v558_v9  ;;  %v1158_v15 = vpop.f32.mrb[23].mxu0 }
 0x8dd   :  { %v31_v15 = vld [vmem:[%s1508_s0 + $0x70] sm:$0xff] }
 0x8de   :  { %v609_v16 = vmax.f32 %v608_v14, 0.0  ;;  %v610_v35 = vmin.f32 %v608_v14, 0.0  ;;  %v30_v14 = vld [vmem:[%s1508_s0 + $0x68] sm:$0xff] }
 0x8e0   :  { %v612_v17 = vpack.c.bf16 %v609_v16, %v609_v16  ;;  %v611_v36 = vmul.f32 %v610_v35, %v1383_v58  ;;  %v34_v16 = vpack.c.bf16 %v31_v15, %v30_v14 }
 0x8e2   :  { %v614_v19 = vshrl.u32 %v612_v17, 16  ;;  %v664_v38 = vadd.f32 %v611_v36, %v1351_v25  ;;  %v33_v17 = vld [vmem:[%s1508_s0 + $0x80] sm:$0xff]  ;;  %v936_v36 = vrot.slane %v1351_v25, 3 }
 0x8e4   :  { %1164 = vmatmul.mubr.msk.bf16.vlgmr.msra.gmra.mrb[20].mxu1 %vm41_vm1, %v614_v19 }
 0x8e5   :  { %1176 = vmatpush3.bf16.msra.mxu1 %v1293_v8  ;;  %1179 = vmatprep.mubr.msk.bf16.mxu1 %vm1260_vm0, %v1259_v3 }
 0x8e6   :  { %1177 = vmatprep.subr.bf16.mxu1 %v1259_v3 }
 0x8e9   :  { %1178 = vmatpush3.bf16.msra.mxu1 %v1310_v13 }
 0x8ea   :  { %1191 = vmatprep.subr.bf16.mxu1 %v1259_v3 }
 0x9b7   :  { %v653_v20 = vpop.f32.mrb[20].mxu1 }
 0x9b8   :  { %v660_v22 = vrot.slane %v653_v20, 3  ;;  %v1165_v26 = vpop.f32.mrb[21].mxu1 }
 0x9b9   :  { %v656_v27 = vpop.f32.mrb[22].mxu1 }
 0x9ba   :  { %v662_v29 = vadd.f32 %v660_v22, %v1356_v28  ;;  %v1166_v30 = vpop.f32.mrb[23].mxu1 }
 0x9bc   :  { %1229 = vtanh.f32 %v662_v29 }
 0x9c6   :  { %v1230_v31 = vpop.eup %1229 }
 0x9c7   :  { %v665_v32 = vpack.c.bf16 %v1230_v31, %v1230_v31 }
 0x9c9   :  { %v667_v33 = vshrl.u32 %v665_v32, 16 }
 0x9cb   :  { %v669_v34 = vrot.slane %v667_v33, 2 }
 0x9cd   :  { %1172 = vmatmul.mubr.msk.bf16.vlgmr.msra.gmra.mrb[24].mxu0 %vm41_vm1, %v669_v34 }
 0x9ce   :  { %1184 = vmatpush3.bf16.msra.mxu0 %v1331_v18  ;;  %1187 = vmatprep.mubr.msk.bf16.mxu0 %vm1260_vm0, %v1259_v3 }
 0x9cf   :  { %1185 = vmatprep.subr.bf16.mxu0 %v1259_v3 }
 0x9d2   :  { %1186 = vmatpush3.bf16.msra.mxu0 %v1341_v21 }
 0x9d3   :  { %1199 = vmatprep.subr.bf16.mxu0 %v1259_v3 }
 0xaa0   :  { %v707_v37 = vpop.f32.mrb[24].mxu0 }
 0xaa1   :  { %v714_v39 = vrot.slane %v707_v37, 7  ;;  %v1173_v40 = vpop.f32.mrb[25].mxu0 }
 0xaa2   :  { %v710_v41 = vpop.f32.mrb[26].mxu0 }
 0xaa3   :  { %v716_v42 = vadd.f32 %v714_v39, %v664_v38  ;;  %v1174_v43 = vpop.f32.mrb[27].mxu0 }
 0xaa5   :  { %v717_v44 = vmax.f32 %v716_v42, 0.0 }
 0xaa7   :  { %v720_v45 = vpack.c.bf16 %v717_v44, %v717_v44 }
 0xaa9   :  { %v722_v46 = vshrl.u32 %v720_v45, 16 }
 0xaab   :  { %1180 = vmatmul.mubr.msk.bf16.vlgmr.msra.gmra.mrb[24].mxu1 %vm41_vm1, %v722_v46 }
 0xaac   :  { %1192 = vmatpush3.bf16.msra.mxu1 %v1293_v8  ;;  %1195 = vmatprep.mubr.msk.bf16.mxu1 %vm1260_vm0, %v1259_v3 }
 0xaad   :  { %1193 = vmatprep.subr.bf16.mxu1 %v1259_v3 }
 0xab0   :  { %1194 = vmatpush3.bf16.msra.mxu1 %v1310_v13  ;;  %v718_v13 = vmin.f32 %v716_v42, 0.0 }
 0xab1   :  { %1207 = vmatprep.subr.bf16.mxu1 %v1259_v3 }
 0xab2   :  { %v719_v55 = vmul.f32 %v718_v13, %v1383_v58 }
 0xab4   :  { %v772_v57 = vadd.f32 %v719_v55, %v1351_v25 }
 0xb7e   :  { %v761_v47 = vpop.f32.mrb[24].mxu1 }
 0xb7f   :  { %v768_v48 = vrot.slane %v761_v47, 2  ;;  %v1181_v49 = vpop.f32.mrb[25].mxu1 }
 0xb80   :  { %v764_v50 = vpop.f32.mrb[26].mxu1 }
 0xb81   :  { %v770_v51 = vadd.f32 %v768_v48, %v1356_v28  ;;  %v1182_v52 = vpop.f32.mrb[27].mxu1 }
 0xb83   :  { %1231 = vtanh.f32 %v770_v51 }
 0xb8d   :  { %v1232_v53 = vpop.eup %1231 }
 0xb8e   :  { %v773_v54 = vpack.c.bf16 %v1232_v53, %v1232_v53 }
 0xb90   :  { %v775_v8 = vrot.slane %v773_v54, 3 }
 0xb92   :  { %1188 = vmatmul.mubr.msk.bf16.vlgmr.msra.gmra.mrb[28].mxu0 %vm41_vm1, %v775_v8 }
 0xb93   :  { %1200 = vmatpush3.bf16.msra.mxu0 %v1331_v18  ;;  %1203 = vmatprep.mubr.msk.bf16.mxu0 %vm1260_vm0, %v1259_v3 }
 0xb94   :  { %1201 = vmatprep.subr.bf16.mxu0 %v1259_v3 }
 0xb97   :  { %1202 = vmatpush3.bf16.msra.mxu0 %v1341_v21 }
 0xc65   :  { %v813_v56 = vpop.f32.mrb[28].mxu0 }
 0xc66   :  { %v820_v59 = vrot.slane %v813_v56, 7  ;;  %v1189_v60 = vpop.f32.mrb[29].mxu0 }
 0xc67   :  { %v816_v61 = vpop.f32.mrb[30].mxu0 }
 0xc68   :  { %v822_v62 = vadd.f32 %v820_v59, %v772_v57  ;;  %v1190_v63 = vpop.f32.mrb[31].mxu0 }
 0xc6a   :  { %v823_v0 = vmax.f32 %v822_v62, 0.0  ;;  %v824_v20 = vmin.f32 %v822_v62, 0.0 }
 0xc6c   :  { %v826_v18 = vpack.c.bf16 %v823_v0, %v823_v0  ;;  %v825_v22 = vmul.f32 %v824_v20, %v1383_v58 }
 0xc6e   :  { %v828_v1 = vshrl.u32 %v826_v18, 16  ;;  %v878_v27 = vadd.f32 %v825_v22, %v1351_v25 }
 0xc70   :  { %1196 = vmatmul.mubr.msk.bf16.vlgmr.msra.gmra.mrb[28].mxu1 %vm41_vm1, %v828_v1 }
 0xc71   :  { %1211 = vmatprep.mubr.msk.bf16.mxu1 %vm1260_vm0, %v1259_v3  ;;  %1208 = vmatpush3.bf16.msra.mxu1 %v34_v16 }
 0xc72   :  { %1209 = vmatprep.subr.bf16.mxu1 %v1259_v3 }
 0xd43   :  { %v867_v21 = vpop.f32.mrb[28].mxu1 }
 0xd44   :  { %v874_v2 = vrot.slane %v867_v21, 1  ;;  %v1197_v4 = vpop.f32.mrb[29].mxu1 }
 0xd45   :  { %v870_v5 = vpop.f32.mrb[30].mxu1 }
 0xd46   :  { %v876_v6 = vadd.f32 %v874_v2, %v1356_v28  ;;  %v1198_v7 = vpop.f32.mrb[31].mxu1  ;;  %v32_v28 = vld [vmem:[%s1508_s0 + $0x78] sm:$0xff]  ;;  %s1262_s0 = smov [#allocation2]  }
 0xd47   :  { %v35_v19 = vpack.c.bf16 %v33_v17, %v32_v28  ;;  %s992_s13 = sshll.u32 %s1262_s0, 4  ;;  %s993_s13 = int_to_ptr.vmem [resolvable:$true] %s992_s13 }
 0xd48   :  { %1233 = vtanh.f32 %v876_v6  ;;  %s1235_s14 = scalar_lea.vmem %s993_s13, 128  ;;  %p1240_p1 = scmp.lt.s32.totalorder %s993_s13, %s993_s13 }
 0xd49   :  { %1210 = vmatpush3.bf16.msra.mxu1 %v35_v19  ;;  %p1236_p0 = scmp.ne.s32.totalorder %s993_s13, %s1235_s14  ;;  %p1241_p2 = scmp.lt.s32.totalorder %s1235_s14, %s1235_s14 }
 0xd4b   :  { %p1242_p3 = por %p1241_p2, %p1240_p1 }
 0xd4d   :  { %p1243_p4 = pnand %p1242_p3, %p1236_p0 }
 0xd52   :  { %v1234_v9 = vpop.eup %1233 }
 0xd53   :  { %v879_v10 = vpack.c.bf16 %v1234_v9, %v1234_v9 }
 0xd55   :  { %v881_v11 = vshrl.u32 %v879_v10, 16 }
 0xd57   :  { %v883_v12 = vrot.slane %v881_v11, 3 }
 0xd59   :  { %1204 = vmatmul.mubr.msk.bf16.vlgmr.msra.gmra.mrb[32].mxu0 %vm41_vm1, %v883_v12 }
 0xe2c   :  { %v921_v26 = vpop.f32.mrb[32].mxu0 }
 0xe2d   :  { %v928_v29 = vrot.slane %v921_v26, 7  ;;  %v1205_v30 = vpop.f32.mrb[33].mxu0 }
 0xe2e   :  { %v924_v31 = vpop.f32.mrb[34].mxu0 }
 0xe2f   :  { %v930_v3 = vadd.f32 %v928_v29, %v878_v27  ;;  %v1206_v32 = vpop.f32.mrb[35].mxu0 }
 0xe31   :  { %v931_v33 = vmax.f32 %v930_v3, 0.0 }
 0xe33   :  { %v932_v34 = vpack.c.bf16 %v931_v33, %v931_v33 }
 0xe35   :  { %v934_v35 = vshrl.u32 %v932_v34, 16 }
 0xe37   :  { %1212 = vmatmul.mubr.msk.bf16.vlgmr.msra.gmra.mrb[32].mxu1 %vm41_vm1, %v934_v35 }
 0xf0a   :  { %v975_v37 = vpop.f32.mrb[32].mxu1 }
 0xf0b   :  { %v976_v38 = vadd.f32 %v975_v37, %v936_v36  ;;  %v1213_v58 = vpop.f32.mrb[33].mxu1 }
 0xf0c   :  { %v978_v39 = vpop.f32.mrb[34].mxu1 }
 0xf0d   :  { %v984_v40 = vrot.slane %v976_v38, %v39_v24  ;;  %v1214_v41 = vpop.f32.mrb[35].mxu1 }
 0xf0f   :  { %985 = vst.msk [vmem:[#allocation2] sm:$0xff] %vm41_vm1, %v984_v40 }
 0xf10   :  { %1246 = shalt.err (!%p1243_p4)
}
 0xf11   :  { %s1247_s17 = scalar_lea.hbm %s1509_s1, 128 }
 0xf12   :  { %p1248_p5 = scmp.ne.s32.totalorder %s1509_s1, %s1247_s17  ;;  %p1251_p6 = scmp.lt.u32.totalorder %s1247_s17, %s1509_s1 }
 0xf14   :  { %p1253_p7 = pnand %p1251_p6, %p1248_p5 }
 0xf16   :  { %1256 = shalt.err (!%p1253_p7)
}
 0xf17   :  { %995 = dma.vmem_to_hbm [thread:$0]  %s993_s13, 128, %s1509_s1, [#allocation3]  }
 0xf18   :  { %1257 = dma.done.wait [#allocation3], 128  }
 0xf19   :  { %1258 = vsyncadd [#allocation3], 4294967168 }
 0xf1a   :  { %999 = vsyncpa [#allocation3], 1 }

</bundles_post_ra>
